<compile_context>
chip_gen: v7x
topology: tpu7x:2x2x1
jax: 0.10.0
libtpu: 0.0.40
codegen_flags: <defaults>
</compile_context>

<pallas_src>
import numpy as np
import jax
import jax.numpy as jnp
from jax.experimental import pallas as pl
from jax.experimental.pallas import tpu as pltpu


_MIN_GRID_STEPS = 8                      # enough grid steps to hide DMA / feed megacore
_TILE_BUDGET_BYTES = 4 * 1024 * 1024     # padded bytes per tile: 2 bufs x (in+out) x 4MiB = 16MiB
_VMEM_FLOOR = 32 * 1024 * 1024           # v5e default scoped VMEM is only 16 MiB -> raise it
_VMEM_CEIL = 48 * 1024 * 1024            # headroom under v7x's 64 MiB physical VMEM


def _round_up(x, m):
    return -(-x // m) * m


def _sublane_multiple(dsize):
    # f32 -> 8 sublanes, bf16/f16 -> 16, int8/fp8 -> 32 (packed-dtype tiling)
    return max(8, 32 // dsize)


# --------------------------------------------------------------------------- kernels

def _categorical_kernel_sublane(params_ref, x_ref, o_ref):
    """(t_pre, C, t_post) tiles: C on SUBLANES, post on LANES. Reduce over axis=-2."""
    n = x_ref.shape[-2]                       # static categorical size C (always full)
    shift = params_ref[0]
    scale = params_ref[1]
    x = (x_ref[...].astype(jnp.float32) + shift) * scale   # identity when offset == 0
    log_x = jnp.log(x)
    norm = jnp.sum(log_x, axis=-2, keepdims=True)           # sublane (XLU) reduce over C
    o_ref[...] = (log_x - norm * (1.0 / n)).astype(o_ref.dtype)


def _categorical_kernel_lane(params_ref, x_ref, o_ref):
    """(t_rows, C) tiles: C on LANES. Reduce over axis=-1."""
    n = x_ref.shape[-1]                       # static categorical size C (always full)
    shift = params_ref[0]
    scale = params_ref[1]
    x = (x_ref[...].astype(jnp.float32) + shift) * scale
    log_x = jnp.log(x)
    norm = jnp.sum(log_x, axis=-1, keepdims=True)            # lane (XLU) reduce over C
    o_ref[...] = (log_x - norm * (1.0 / n)).astype(o_ref.dtype)


# --------------------------------------------------------------------------- tiling

def _choose_tiles_3d(pre, C, post, dsize, budget):
    """Tiles for the (pre, C, post) layout. Budget is in *padded* VMEM bytes."""
    sub = _sublane_multiple(dsize)
    c_pad = _round_up(C, sub)                 # sublane padding of the categorical axis
    per_lane = c_pad * dsize
    max_lanes = max(128, (budget // per_lane) // 128 * 128)

    if post <= max_lanes:
        t_post, n_post = post, 1              # full dim -> always a legal block
    else:
        t_post = max_lanes                    # non-dividing is fine (boundary masked)
        if post % 128 == 0:
            # Prefer a dividing multiple of 128 (no masked boundary), but keep each
            # contiguous DMA row >= 512 lanes (2 KiB f32) for DMA efficiency (v5e).
            floor_lanes = min(512, max_lanes)
            for cand in range(max_lanes, floor_lanes - 1, -128):
                if post % cand == 0:
                    t_post = cand
                    break
        n_post = pl.cdiv(post, t_post)

    per_row = c_pad * _round_up(t_post, 128) * dsize
    cap = min(pre, max(1, budget // per_row))
    n_pre = pl.cdiv(pre, cap)
    total = n_pre * n_post
    if 1 < total < _MIN_GRID_STEPS:
        # Shrink t_pre so the grid has enough steps to pipeline DMA / feed both v7x cores.
        want_pre = pl.cdiv(_MIN_GRID_STEPS, n_post)
        cap = max(1, min(cap, pl.cdiv(pre, want_pre)))
    t_pre = cap
    # Prefer (but do not require) a divisor of `pre` near the cap: avoids a masked
    # boundary block without exploding the grid when `pre` is prime/odd.
    for d in range(cap, max(1, (3 * cap) // 4), -1):
        if pre % d == 0:
            t_pre = d
            break
    n_pre = pl.cdiv(pre, t_pre)
    return t_pre, t_post, n_pre, n_post


def _choose_tiles_2d(rows, C, dsize, budget):
    """Tiles for the (rows, C) layout (categorical axis on lanes)."""
    sub = _sublane_multiple(dsize)
    per_row = _round_up(C, 128) * dsize       # lane padding of C
    max_rows = max(sub, (budget // per_row) // sub * sub)
    if rows <= max_rows:
        return rows, 1                        # full dim -> always a legal block
    t_rows = max_rows
    n_rows = pl.cdiv(rows, t_rows)
    if n_rows < _MIN_GRID_STEPS:
        t_rows = max(sub, _round_up(pl.cdiv(rows, _MIN_GRID_STEPS), sub))
        n_rows = pl.cdiv(rows, t_rows)
    return t_rows, n_rows


# --------------------------------------------------------------------------- wrapper

def categorical_forward(x, log_offset, dim=1, *, tile_budget_bytes=_TILE_BUDGET_BYTES):
    """JAX/Pallas equivalent of Categorical(dim, offset).forward(x)."""
    shape = x.shape
    dim = dim % x.ndim
    C = shape[dim]
    pre = int(np.prod(shape[:dim], dtype=np.int64)) if dim > 0 else 1
    post = int(np.prod(shape[dim + 1:], dtype=np.int64)) if dim < x.ndim - 1 else 1

    # Scalar precompute hoisted out of the per-element path:
    #   offset > 0:  x -> (x + offset) * (1 / (1 + offset * C))
    #   offset == 0: identity (shift = 0, scale = 1)
    offset = jnp.exp(log_offset).astype(jnp.float32)
    has_off = offset > 0
    shift = jnp.where(has_off, offset, jnp.float32(0.0))
    scale = jnp.where(has_off, 1.0 / (1.0 + offset * C), jnp.float32(1.0))
    params = jnp.stack([shift, scale]).astype(jnp.float32)

    dsize = np.dtype(x.dtype).itemsize
    sub = _sublane_multiple(dsize)

    if post == 1:
        # Categorical axis is the minor (contiguous) axis: 2-D view (rows, C) with C on
        # the LANE axis -> lane-dense access and a lane reduce.
        rows = pre
        x2 = x.reshape(rows, C)                                   # pure metadata reshape
        t_rows, n_rows = _choose_tiles_2d(rows, C, dsize, tile_budget_bytes)
        tile_padded = _round_up(t_rows, sub) * _round_up(C, 128) * dsize
        vmem_limit = int(min(max(_VMEM_FLOOR, 8 * tile_padded), _VMEM_CEIL))
        # TODO(synk): for C < 128 this path still under-fills lanes; packing several
        # categorical rows per vreg row needs a segmented lane reduce (roll/add tree or
        # block-diagonal matmul) and is left out for simplicity.
        out2 = pl.pallas_call(
            _categorical_kernel_lane,
            out_shape=jax.ShapeDtypeStruct((rows, C), x.dtype),
            grid=(n_rows,),
            in_specs=[
                pl.BlockSpec(memory_space=pltpu.MemorySpace.SMEM),   # [shift, scale]
                pl.BlockSpec((t_rows, C), lambda i: (i, 0)),
            ],
            out_specs=pl.BlockSpec((t_rows, C), lambda i: (i, 0)),
            compiler_params=pltpu.CompilerParams(
                dimension_semantics=("parallel",),
                vmem_limit_bytes=vmem_limit),
        )(params, x2)
        return out2.reshape(shape)

    # General path: (pre, C, post) view, C on SUBLANES (full per block), post on LANES.
    x3 = x.reshape(pre, C, post)                                  # pure metadata reshape
    t_pre, t_post, n_pre, n_post = _choose_tiles_3d(pre, C, post, dsize, tile_budget_bytes)
    c_pad = _round_up(C, sub)
    tile_padded = t_pre * c_pad * _round_up(t_post, 128) * dsize
    vmem_limit = int(min(max(_VMEM_FLOOR, 8 * tile_padded), _VMEM_CEIL))
    # TODO(synk): extremely large C (single padded tile > ~8 MiB) would need a two-pass
    # reduction that tiles the C axis; not required for typical categorical sizes.
    out3 = pl.pallas_call(
        _categorical_kernel_sublane,
        out_shape=jax.ShapeDtypeStruct((pre, C, post), x.dtype),
        grid=(n_pre, n_post),
        in_specs=[
            pl.BlockSpec(memory_space=pltpu.MemorySpace.SMEM),       # [shift, scale]
            pl.BlockSpec((t_pre, C, t_post), lambda i, j: (i, 0, j)),
        ],
        out_specs=pl.BlockSpec((t_pre, C, t_post), lambda i, j: (i, 0, j)),
        compiler_params=pltpu.CompilerParams(
            dimension_semantics=("parallel", "parallel"),
            vmem_limit_bytes=vmem_limit),
    )(params, x3)
    return out3.reshape(shape)


# --------------------------------------------------------------------------- reference / test

def _reference_forward(x, dim, offset):
    """Pure-JAX reference mirroring Categorical.map semantics."""
    n = x.shape[dim]
    x = jnp.where(offset > 0, (x + offset) / (1.0 + offset * n), x)
    log_x = jnp.log(x)
    norm = jnp.sum(log_x, axis=dim, keepdims=True)
    return log_x - norm / n


if __name__ == "__main__":
    key = jax.random.PRNGKey(0)

    cases = [
        # (shape, dim, tile_budget) -- smaller budgets are used on some cases purely to
        # exercise the multi-block / masked-boundary code paths at small test shapes.
        ((2, 4, 16, 16), 1, _TILE_BUDGET_BYTES),   # NCHW channel categorical (3-D path)
        ((2, 16, 16, 8), -1, _TILE_BUDGET_BYTES),  # categorical over last axis (2-D path)
        ((6, 4, 16, 20), 1, 8 * 1024),             # non-dividing lane tiles + grid over pre
        ((37, 12), 1, 1024),                       # 2-D path with masked boundary rows
    ]

    keys = jax.random.split(key, len(cases))
    for (shape, dim, budget), k in zip(cases, keys):
        raw = jax.random.uniform(k, shape, jnp.float32, minval=0.1, maxval=1.0)
        x = raw / jnp.sum(raw, axis=dim, keepdims=True)   # proper categorical probabilities

        # Deterministic parameter init (module's __init__):
        #   offset == 0    -> _log_offset = -inf
        #   offset == 0.25 -> _log_offset = log(0.25)
        for offset_val in (0.0, 0.25):
            log_offset = jnp.array(
                -np.inf if offset_val == 0.0 else np.log(offset_val), dtype=jnp.float32)

            out = categorical_forward(x, log_offset, dim=dim, tile_budget_bytes=budget)
            out = jax.block_until_ready(out)

            ref = _reference_forward(x, dim=dim, offset=jnp.exp(log_offset))
            assert out.shape == x.shape and out.dtype == x.dtype
            np.testing.assert_allclose(np.asarray(out), np.asarray(ref),
                                       rtol=1e-5, atol=1e-5)

    print("KERNEL_OK")
</pallas_src>

<mosaic_0001>
module attributes {stable_mosaic.version = 11 : i64} {
  func.func @_categorical_kernel_sublane(%arg0: i32, %arg1: i32, %arg2: memref<2xf32, #tpu.memory_space<smem>>, %arg3: memref<2x4x256xf32, #tpu.memory_space<vmem>>, %arg4: memref<2x4x256xf32, #tpu.memory_space<vmem>>) attributes {dimension_semantics = [#tpu.dimension_semantics<parallel>, #tpu.dimension_semantics<parallel>], iteration_bounds = array<i64: 1, 1>, scalar_prefetch = 0 : i64, scratch_operands = 0 : i64, tpu.core_type = #tpu.core_type<tc>, window_params = [{transform_indices = @transform_0, window_bounds = array<i64: 2>}, {transform_indices = @transform_1, window_bounds = array<i64: 2, 4, 256>}, {transform_indices = @transform_2, window_bounds = array<i64: 2, 4, 256>}]} {
    %c0 = arith.constant 0 : index
    %0 = memref.load %arg2[%c0] : memref<2xf32, #tpu.memory_space<smem>>
    %c1 = arith.constant 1 : index
    %1 = memref.load %arg2[%c1] : memref<2xf32, #tpu.memory_space<smem>>
    %c0_0 = arith.constant 0 : index
    %c0_1 = arith.constant 0 : index
    %c0_2 = arith.constant 0 : index
    %2 = vector.load %arg3[%c0_0, %c0_1, %c0_2] : memref<2x4x256xf32, #tpu.memory_space<vmem>>, vector<2x4x256xf32>
    %3 = vector.broadcast %0 : f32 to vector<2x4x256xf32>
    %4 = arith.addf %2, %3 : vector<2x4x256xf32>
    %5 = vector.broadcast %1 : f32 to vector<2x4x256xf32>
    %6 = arith.mulf %4, %5 : vector<2x4x256xf32>
    %7 = math.log %6 : vector<2x4x256xf32>
    %cst = arith.constant dense<0.000000e+00> : vector<2x256xf32>
    %8 = vector.multi_reduction <add>, %7, %cst [1] : vector<2x4x256xf32> to vector<2x256xf32>
    %9 = vector.shape_cast %8 : vector<2x256xf32> to vector<2x1x256xf32>
    %cst_3 = arith.constant 2.500000e-01 : f32
    %10 = vector.broadcast %cst_3 : f32 to vector<2x1x256xf32>
    %11 = arith.mulf %9, %10 : vector<2x1x256xf32>
    %12 = vector.broadcast %11 : vector<2x1x256xf32> to vector<2x4x256xf32>
    %13 = arith.subf %7, %12 : vector<2x4x256xf32>
    %c0_4 = arith.constant 0 : index
    %c0_5 = arith.constant 0 : index
    %c0_6 = arith.constant 0 : index
    %14 = vector.load %arg4[%c0_4, %c0_5, %c0_6] : memref<2x4x256xf32, #tpu.memory_space<vmem>>, vector<2x4x256xf32>
    tpu.vector_store %arg4[%c0_4, %c0_5, %c0_6], %13 {strides = array<i32>} : memref<2x4x256xf32, #tpu.memory_space<vmem>>, vector<2x4x256xf32>,
    return
  }
  func.func @transform_0(%arg0: i32, %arg1: i32) -> i32 {
    %c0_i32 = arith.constant 0 : i32
    %c0_i32_0 = arith.constant 0 : i32
    return %c0_i32 : i32
  }
  func.func @transform_1(%arg0: i32, %arg1: i32) -> (i32, i32, i32) {
    %c0_i32 = arith.constant 0 : i32
    %c0_i32_0 = arith.constant 0 : i32
    return %arg0, %c0_i32, %arg1 : i32, i32, i32
  }
  func.func @transform_2(%arg0: i32, %arg1: i32) -> (i32, i32, i32) {
    %c0_i32 = arith.constant 0 : i32
    %c0_i32_0 = arith.constant 0 : i32
    return %arg0, %c0_i32, %arg1 : i32, i32, i32
  }
}

</mosaic_0001>

<bundles_post_ra>
// kernel: tpu_custom_call.1
= control target key start
LH: loop header
LB: loop body
LE: loop exit
PB: predicated region body
PF: predicated region fallthrough
CT: control target
= control target key end

     0   :  { %7 = vsyncpa [#allocation5], 0  ;;  %s252_s0 = inlined_call_operand.hbm [shape: f32[2], index: 0, kind: input, shape index: {}]   ;;  %s253_s1 = inlined_call_operand.hbm [shape: f32[2,4,256], index: 1, kind: input, shape index: {}]   ;;  %s254_s2 = inlined_call_operand.hbm [shape: f32[2,4,256], index: 2, kind: output, shape index: {}]  }
   0x1   :  { %8 = vsyncpa [#allocation3], 0 }
   0x2   :  { %9 = vsyncpa [#allocation4], 0  ;;  %s130_s11 = scalar_lea.hbm %s252_s0, 16 }
   0x3   :  { %p131_p0 = scmp.ne.s32.totalorder %s252_s0, %s130_s11  ;;  %p134_p1 = scmp.lt.u32.totalorder %s130_s11, %s252_s0 }
   0x5   :  { %p136_p2 = pnand %p134_p1, %p131_p0 }
   0x7   :  { %139 = shalt.err (!%p136_p2)
}
   0x8   :  { %s190_s16 = smov [#allocation2]   ;;  %s191_s19 = smov [#allocation6]  }
   0x9   :  { %17 = dma.hbm_to_smem %s252_s0, 16, %s190_s16, [#allocation5]  }
   0xa   :  { %s23_s20 = sshll.u32 %s191_s19, 4  ;;  %s140_s23 = scalar_lea.hbm %s253_s1, 256  ;;  %s24_s20 = int_to_ptr.vmem [resolvable:$true] %s23_s20 }
   0xb   :  { %p141_p3 = scmp.ne.s32.totalorder %s253_s1, %s140_s23  ;;  %p144_p4 = scmp.lt.u32.totalorder %s140_s23, %s253_s1 }
   0xd   :  { %p146_p5 = pnand %p144_p4, %p141_p3 }
   0xf   :  { %149 = shalt.err (!%p146_p5)
}
  0x10   :  { %s150_s28 = scalar_lea.vmem %s24_s20, 256  ;;  %p155_p7 = scmp.lt.s32.totalorder %s24_s20, %s24_s20 }
  0x11   :  { %p151_p6 = scmp.ne.s32.totalorder %s24_s20, %s150_s28  ;;  %p156_p8 = scmp.lt.s32.totalorder %s150_s28, %s150_s28 }
  0x13   :  { %p157_p9 = por %p156_p8, %p155_p7 }
  0x15   :  { %p158_p10 = pnand %p157_p9, %p151_p6 }
  0x17   :  { %161 = shalt.err (!%p158_p10)
}
  0x18   :  { %s192_s0 = smov 128   ;;  %s193_s29 = smov 8  }
  0x19   :  { %29 = dma.hbm_to_vmem [thread:$0]  %s253_s1, 256, %s24_s20, [#allocation3], %s192_s0, %s192_s0, %s193_s29  }
  0x1a   :  { %184 = dma.done.wait [#allocation5], 16  }
  0x1b   :  { %185 = vsyncadd [#allocation5], 4294967280 }
  0x1c   :  { %186 = dma.done.wait [#allocation3], 256  }
  0x1d   :  { %187 = vsyncadd [#allocation3], 4294967040 }
  0x1e   :  { %36 = sfence }
  0x1f   :  { %s37_s4 = sld [smem:[#allocation2]]  ;;  %s120_s5 = sld [smem:[#allocation2 + $0x1]]  ;;  %v39_v0 = vld [vmem:[#allocation6] sm:$0xff]  ;;  %v40_v1 = vld [vmem:[#allocation6 + $0x8] sm:$0xff]  ;;  %vm57_vm0 = vcmask 1043456  }
  0x20   :  { %s194_s1 = smov [#allocation7]  }
  0x21   :  { %s107_s6 = sshll.u32 %s194_s1, 4  ;;  %s108_s6 = int_to_ptr.vmem [resolvable:$true] %s107_s6 }
  0x22   :  { %s162_s7 = scalar_lea.vmem %s108_s6, 256  ;;  %p167_p12 = scmp.lt.s32.totalorder %s108_s6, %s108_s6 }
  0x23   :  { %p163_p11 = scmp.ne.s32.totalorder %s108_s6, %s162_s7  ;;  %p168_p13 = scmp.lt.s32.totalorder %s162_s7, %s162_s7 }
  0x25   :  { %v41_v2 = vstv %s37_s4  ;;  %v44_v3 = vstv %s120_s5  ;;  %p169_p0 = por %p168_p13, %p167_p12 }
  0x26   :  { %v42_v4 = vadd.f32 %v41_v2, %v39_v0  ;;  %v43_v5 = vadd.f32 %v41_v2, %v40_v1 }
  0x27   :  { %p170_p1 = pnand %p169_p0, %p163_p11 }
  0x28   :  { %v45_v6 = vmul.f32 %v44_v3, %v42_v4  ;;  %v46_v7 = vmul.f32 %v44_v3, %v43_v5 }
  0x2a   :  { %126 = vlog2.f32 %v45_v6 }
  0x2b   :  { %128 = vlog2.f32 %v46_v7 }
  0x34   :  { %v127_v8 = vpop.eup %126 }
  0x35   :  { %v129_v9 = vpop.eup %128  ;;  %v48_v10 = vmul.f32 0.6931472, %v127_v8 }
  0x36   :  { %v50_v11 = vmul.f32 0.6931472, %v129_v9 }
  0x37   :  { %v53_v12 = vcombine.high %v48_v10, %v48_v10  ;;  %v58_v13 = vsel %vm57_vm0, %v48_v10, 0.0 }
  0x38   :  { %v59_v14 = vrot.slane %v58_v13, 4  ;;  %v54_v15 = vcombine.high %v50_v11, %v50_v11  ;;  %v72_v16 = vsel %vm57_vm0, %v50_v11, 0.0 }
  0x39   :  { %v65_v17 = vsel %vm57_vm0, %v53_v12, 0.0  ;;  %v73_v18 = vrot.slane %v72_v16, 4 }
  0x3a   :  { %v60_v19 = vadd.f32 %v59_v14, %v58_v13  ;;  %v66_v20 = vrot.slane %v65_v17, 4  ;;  %v79_v21 = vsel %vm57_vm0, %v54_v15, 0.0 }
  0x3b   :  { %v74_v22 = vadd.f32 %v73_v18, %v72_v16  ;;  %v80_v23 = vrot.slane %v79_v21, 4 }
  0x3c   :  { %v61_v24 = vrot.slane %v60_v19, 2  ;;  %v67_v25 = vadd.f32 %v66_v20, %v65_v17 }
  0x3d   :  { %v75_v26 = vrot.slane %v74_v22, 2  ;;  %v81_v27 = vadd.f32 %v80_v23, %v79_v21 }
  0x3e   :  { %v62_v28 = vadd.f32 %v61_v24, %v60_v19  ;;  %v68_v29 = vrot.slane %v67_v25, 2 }
  0x3f   :  { %v76_v30 = vadd.f32 %v75_v26, %v74_v22  ;;  %v82_v31 = vrot.slane %v81_v27, 2 }
  0x40   :  { %v63_v32 = vrot.slane %v62_v28, 1  ;;  %v69_v33 = vadd.f32 %v68_v29, %v67_v25 }
  0x41   :  { %v77_v34 = vrot.slane %v76_v30, 1  ;;  %v83_v35 = vadd.f32 %v82_v31, %v81_v27 }
  0x42   :  { %v64_v36 = vadd.f32 %v63_v32, %v62_v28  ;;  %v70_v37 = vrot.slane %v69_v33, 1 }
  0x43   :  { %v78_v38 = vadd.f32 %v77_v34, %v76_v30  ;;  %v84_v39 = vrot.slane %v83_v35, 1 }
  0x44   :  { %v71_v40 = vadd.f32 %v70_v37, %v69_v33  ;;  %v86_v41 = vmul.f32 0.25, %v64_v36 }
  0x45   :  { %v85_v42 = vadd.f32 %v84_v39, %v83_v35  ;;  %v88_v43 = vmul.f32 0.25, %v78_v38 }
  0x46   :  { %v87_v44 = vmul.f32 0.25, %v71_v40 }
  0x47   :  { %v89_v45 = vmul.f32 0.25, %v85_v42 }
  0x48   :  { %v94_v46 = vcombine.low %v86_v41, %v87_v44 }
  0x49   :  { %v95_v47 = vcombine.low %v88_v43, %v89_v45 }
  0x4a   :  { %v98_v48 = vsub.f32 %v48_v10, %v94_v46 }
  0x4b   :  { %v99_v49 = vsub.f32 %v50_v11, %v95_v47 }
  0x4c   :  { %100 = vst [vmem:[#allocation7] sm:$0xff] %v98_v48 }
  0x4d   :  { %101 = vst [vmem:[#allocation7 + $0x8] sm:$0xff] %v99_v49 }
  0x4e   :  { %173 = shalt.err (!%p170_p1)
}
  0x4f   :  { %s174_s10 = scalar_lea.hbm %s254_s2, 256 }
  0x50   :  { %p175_p2 = scmp.ne.s32.totalorder %s254_s2, %s174_s10  ;;  %p178_p3 = scmp.lt.u32.totalorder %s174_s10, %s254_s2 }
  0x52   :  { %p180_p4 = pnand %p178_p3, %p175_p2 }
  0x54   :  { %183 = shalt.err (!%p180_p4)
}
  0x55   :  { %113 = dma.vmem_to_hbm [thread:$0]  %s108_s6, 256, %s254_s2, [#allocation4], %s192_s0, %s192_s0, %s193_s29  }
  0x56   :  { %188 = dma.done.wait [#allocation4], 256  }
  0x57   :  { %189 = vsyncadd [#allocation4], 4294967040 }
  0x58   :  { %117 = vsyncpa [#allocation3], 1 }
  0x59   :  { %118 = vsyncpa [#allocation4], 1 }
  0x5a   :  { %119 = vsyncpa [#allocation5], 1 }

</bundles_post_ra>
